<compile_context>
chip_gen: v6e
topology: v6e:2x2x1
jax: 0.10.0
libtpu: 0.0.40
codegen_flags: <defaults>
</compile_context>

<pallas_src>
import jax
import jax.numpy as jnp
from jax.experimental import pallas as pl
from jax.experimental.pallas import tpu as pltpu


VMEM_CAP_BYTES = 56 * 1024 * 1024  # leave compiler-scratch headroom under v7x's 64 MiB VMEM


def _round_up(x: int, m: int) -> int:
    return ((x + m - 1) // m) * m


def _resident_spec(block_shape, index_map):
    """Grid-invariant block: request a single VMEM buffer (no double-buffering of a constant
    block).  Falls back to the default spec if pipeline_mode / Buffered is unavailable."""
    try:
        return pl.BlockSpec(block_shape, index_map, pipeline_mode=pl.Buffered(1))
    except Exception:  # pragma: no cover - older jax without pipeline_mode
        return pl.BlockSpec(block_shape, index_map)


def _pick_batch_tile(B: int, batch_tile: int, q: int) -> int:
    """Batch tile: multiple of the sublane quantum, big (roofline), but >= 2 grid steps when
    the batch allows it so a dual-TensorCore chip (v7x) gets work on both cores."""
    batch_tile = max(q, _round_up(batch_tile, q))
    if B > 2 * q:
        tb = min(batch_tile, _round_up(pl.cdiv(B, 2), q))
    else:
        tb = min(batch_tile, _round_up(B, q))
    return max(q, tb)


# ----------------------------------------------------------------------------- kernels ---

def fused_affine_kernel(x_ref, w_ref, b_ref, o_ref):
    """out_tile = x_tile @ W_fused[:, n_tile] + b_fused[n_tile]  (one MXU pass, f32 acc)."""
    x = x_ref[...].astype(w_ref.dtype)  # in-kernel cast: bf16 weights w/o an extra HBM pass on x
    acc = jnp.dot(x, w_ref[...], preferred_element_type=jnp.float32)
    o_ref[...] = (acc + b_ref[...]).astype(o_ref.dtype)


def two_stage_kernel(x_ref, w1_ref, b1_ref, w2_ref, b2_ref, o_ref):
    """Un-fused path (low-rank bottleneck guard): h = x@W1.T + (b1+cp1); out = h@W2.T + rest."""
    x = x_ref[...].astype(w1_ref.dtype)
    h = jnp.dot(x, w1_ref[...], preferred_element_type=jnp.float32) + b1_ref[...]
    acc = jnp.dot(h.astype(w2_ref.dtype), w2_ref[...], preferred_element_type=jnp.float32)
    o_ref[...] = (acc + b2_ref[...]).astype(o_ref.dtype)


# ------------------------------------------------------------------ one-time precompute ---

def prepare_params(params, *, compute_dtype=None, fuse_threshold=2.0):
    """Hoisted one-time precompute (amortized across forward calls).

    If in_features <= fuse_threshold * out_features the two bias-only Linears are fused
    exactly into a single (in, in) affine map; otherwise the two-matmul form is kept.
    """
    f32 = jnp.float32
    hi = jax.lax.Precision.HIGHEST
    out_f, in_f = params["w1"].shape
    op_dt = compute_dtype if compute_dtype is not None else f32

    w1_t = params["w1"].astype(f32).T                               # (in, out)
    w2_t = params["w2"].astype(f32).T                               # (out, in)
    b1_eff = (params["b1"] + params["cp1"]).astype(f32)             # (out,)
    b2_eff = (params["b2"] + params["cp2"] + params["cp"]).astype(f32)  # (in,)

    if in_f <= fuse_threshold * out_f:
        w_fused = jnp.dot(w1_t, w2_t, precision=hi)                 # (in, in), exact fusion
        b_fused = jnp.dot(b1_eff, w2_t, precision=hi) + b2_eff      # (in,)
        return {
            "mode": "fused",
            "in_features": in_f,
            "w": w_fused.astype(op_dt),
            "b": b_fused.reshape(1, in_f).astype(f32),
        }
    return {
        "mode": "two_stage",
        "in_features": in_f,
        "out_features": out_f,
        "w1": w1_t.astype(op_dt),
        "b1": b1_eff.reshape(1, out_f).astype(f32),
        "w2": w2_t.astype(op_dt),
        "b2": b2_eff.reshape(1, in_f).astype(f32),
    }


# ----------------------------------------------------------------------------- wrappers ---

def _forward_fused(x, prepared, batch_tile):
    B, in_f = x.shape
    out_dt = x.dtype
    w, b = prepared["w"], prepared["b"]
    x_elt = jnp.dtype(x.dtype).itemsize
    o_elt = jnp.dtype(out_dt).itemsize
    w_elt = jnp.dtype(w.dtype).itemsize
    q = 16 if x_elt == 2 else 8  # sublane quantum for the streamed x/out tiles

    # Output-column (N) tiling only when the resident weight would not fit comfortably.
    if in_f * in_f * w_elt <= VMEM_CAP_BYTES // 3:
        TN = in_f
    else:
        TN = max(128, ((VMEM_CAP_BYTES // 3) // (2 * in_f * w_elt)) // 128 * 128)
    n_tiles = pl.cdiv(in_f, TN)
    w_buffers = 1 if n_tiles == 1 else 2
    # TODO(synk): add a K-reduction grid axis (f32 VMEM accumulator + pl.when init/finalize)
    # once in_features >= ~4096 so neither the K nor the N extent must be VMEM-resident.

    TB = _pick_batch_tile(B, batch_tile, q)

    def vmem_need(tb):
        return (w_buffers * in_f * TN * w_elt      # weight (single-buffered when constant)
                + 2 * tb * in_f * x_elt            # double-buffered x tiles
                + 2 * tb * TN * o_elt              # double-buffered out tiles
                + 2 * TN * 4)                      # bias

    while TB > q and vmem_need(TB) > VMEM_CAP_BYTES:
        TB = max(q, _round_up(TB // 2, q))

    vmem_limit = int(min(VMEM_CAP_BYTES,
                         max(16 * 1024 * 1024, int(1.25 * vmem_need(TB)) + (1 << 20))))
    cost = pl.CostEstimate(
        flops=2 * B * in_f * in_f,
        transcendentals=0,
        bytes_accessed=B * in_f * (x_elt + o_elt) + in_f * in_f * w_elt + in_f * 4,
    )

    w_map = lambda i, j: (0, j)
    w_spec = (_resident_spec((in_f, TN), w_map) if n_tiles == 1
              else pl.BlockSpec((in_f, TN), w_map))

    return pl.pallas_call(
        fused_affine_kernel,
        out_shape=jax.ShapeDtypeStruct((B, in_f), out_dt),
        grid=(pl.cdiv(B, TB), n_tiles),
        in_specs=[
            pl.BlockSpec((TB, in_f), lambda i, j: (i, 0)),   # x: streamed per batch tile
            w_spec,                                          # W_fused: VMEM-resident
            pl.BlockSpec((1, TN), lambda i, j: (0, j)),      # b_fused
        ],
        out_specs=pl.BlockSpec((TB, TN), lambda i, j: (i, j)),
        compiler_params=pltpu.CompilerParams(
            dimension_semantics=("parallel", "parallel"),    # v7x: shard over 2 TensorCores
            vmem_limit_bytes=vmem_limit,
        ),
        cost_estimate=cost,
    )(x, w, b)


def _forward_two_stage(x, prepared, batch_tile):
    B, in_f = x.shape
    out_f = prepared["out_features"]
    out_dt = x.dtype
    w1, b1 = prepared["w1"], prepared["b1"]
    w2, b2 = prepared["w2"], prepared["b2"]
    x_elt = jnp.dtype(x.dtype).itemsize
    o_elt = jnp.dtype(out_dt).itemsize
    w_elt = jnp.dtype(w1.dtype).itemsize
    q = 16 if x_elt == 2 else 8

    TB = _pick_batch_tile(B, batch_tile, q)
    w_bytes = 2 * in_f * out_f * w_elt + (in_f + out_f) * 4

    def vmem_need(tb):
        return (w_bytes
                + 2 * tb * in_f * x_elt            # x tiles
                + 2 * tb * in_f * o_elt            # out tiles
                + tb * out_f * 4)                  # f32 intermediate h

    while TB > q and vmem_need(TB) > VMEM_CAP_BYTES:
        TB = max(q, _round_up(TB // 2, q))

    vmem_limit = int(min(VMEM_CAP_BYTES,
                         max(16 * 1024 * 1024, int(1.25 * vmem_need(TB)) + (1 << 20))))
    cost = pl.CostEstimate(
        flops=4 * B * in_f * out_f,
        transcendentals=0,
        bytes_accessed=B * in_f * (x_elt + o_elt) + 2 * in_f * out_f * w_elt,
    )

    # TODO(synk): tile the weight dims (N/K grid axes) once 2*in_features*out_features no
    # longer fits VMEM as a resident pair.
    return pl.pallas_call(
        two_stage_kernel,
        out_shape=jax.ShapeDtypeStruct((B, in_f), out_dt),
        grid=(pl.cdiv(B, TB),),
        in_specs=[
            pl.BlockSpec((TB, in_f), lambda i: (i, 0)),       # x: streamed per batch tile
            _resident_spec((in_f, out_f), lambda i: (0, 0)),  # W1.T: VMEM-resident
            pl.BlockSpec((1, out_f), lambda i: (0, 0)),       # b1 + cp1
            _resident_spec((out_f, in_f), lambda i: (0, 0)),  # W2.T: VMEM-resident
            pl.BlockSpec((1, in_f), lambda i: (0, 0)),        # b2 + cp2 + cp
        ],
        out_specs=pl.BlockSpec((TB, in_f), lambda i: (i, 0)),
        compiler_params=pltpu.CompilerParams(
            dimension_semantics=("parallel",),
            vmem_limit_bytes=vmem_limit,
        ),
        cost_estimate=cost,
    )(x, w1, b1, w2, b2)


def complex_module_forward(x, prepared, *, batch_tile=1024):
    """Forward pass of ComplexModule on pre-processed parameters (see prepare_params)."""
    if prepared["mode"] == "fused":
        return _forward_fused(x, prepared, batch_tile)
    return _forward_two_stage(x, prepared, batch_tile)


# ---------------------------------------------------------------------------- reference ---

def init_params(key, in_features, out_features):
    """Deterministic synthetic parameter init (same shapes as the torch module)."""
    ks = jax.random.split(key, 7)
    return {
        "w1": jax.random.normal(ks[0], (out_features, in_features), jnp.float32) * 0.1,
        "b1": jax.random.normal(ks[1], (out_features,), jnp.float32) * 0.1,
        "cp1": jax.random.normal(ks[2], (out_features,), jnp.float32),
        "w2": jax.random.normal(ks[3], (in_features, out_features), jnp.float32) * 0.1,
        "b2": jax.random.normal(ks[4], (in_features,), jnp.float32) * 0.1,
        "cp2": jax.random.normal(ks[5], (in_features,), jnp.float32),
        "cp": jax.random.normal(ks[6], (in_features,), jnp.float32),
    }


def reference_forward(x, p):
    """Pure-JAX reference mirroring the two-Linear torch forward."""
    hi = jax.lax.Precision.HIGHEST
    h = jnp.dot(x, p["w1"].T, precision=hi) + p["b1"] + p["cp1"]
    y = jnp.dot(h, p["w2"].T, precision=hi) + p["b2"] + p["cp2"]
    return y + p["cp"]


if __name__ == "__main__":
    key = jax.random.PRNGKey(0)
    k_x, k_p, k_big, k_p2, k_x2 = jax.random.split(key, 5)

    # 1) fused path (in <= 2*out): in=32, out=64, batch=8 — single grid step, no padding.
    in_f, out_f, batch = 32, 64, 8
    x = jax.random.normal(k_x, (batch, in_f), jnp.float32)
    params = init_params(k_p, in_f, out_f)
    prepared = prepare_params(params)                 # hoisted one-time precompute
    out = jax.block_until_ready(complex_module_forward(x, prepared))
    ref = reference_forward(x, params)
    assert out.shape == (batch, in_f)
    assert jnp.allclose(out, ref, atol=2e-2, rtol=2e-2), "fused f32 path mismatch"

    # 2) larger ragged batch -> multi-step batch grid, no padded HBM copies of x / out.
    x_big = jax.random.normal(k_big, (1000, in_f), jnp.float32)
    out_big = jax.block_until_ready(complex_module_forward(x_big, prepared))
    ref_big = reference_forward(x_big, params)
    assert out_big.shape == (1000, in_f)
    assert jnp.allclose(out_big, ref_big, atol=2e-2, rtol=2e-2), "grid path mismatch"

    # 3) bf16 weights (v5e/v6e/v7x MXU-native), in-kernel x cast, f32 accumulation.
    prepared_bf16 = prepare_params(params, compute_dtype=jnp.bfloat16)
    out_bf16 = jax.block_until_ready(complex_module_forward(x_big, prepared_bf16))
    assert jnp.allclose(out_bf16, ref_big, atol=0.15, rtol=0.15), "bf16 path mismatch"

    # 4) low-rank bottleneck (in > 2*out) -> un-fused two-matmul kernel.
    in_f2, out_f2 = 96, 32
    params2 = init_params(k_p2, in_f2, out_f2)
    x2 = jax.random.normal(k_x2, (24, in_f2), jnp.float32)
    prepared2 = prepare_params(params2)
    assert prepared2["mode"] == "two_stage"
    out2 = jax.block_until_ready(complex_module_forward(x2, prepared2))
    ref2 = reference_forward(x2, params2)
    assert out2.shape == (24, in_f2)
    assert jnp.allclose(out2, ref2, atol=2e-2, rtol=2e-2), "two-stage path mismatch"

    print("KERNEL_OK")
</pallas_src>

<mosaic_0001>
module attributes {stable_mosaic.version = 11 : i64} {
  func.func @fused_affine_kernel(%arg0: i32, %arg1: i32, %arg2: memref<8x32xf32, #tpu.memory_space<vmem>>, %arg3: memref<32x32xf32, #tpu.memory_space<vmem>>, %arg4: memref<1x32xf32, #tpu.memory_space<vmem>>, %arg5: memref<8x32xf32, #tpu.memory_space<vmem>>) attributes {dimension_semantics = [#tpu.dimension_semantics<parallel>, #tpu.dimension_semantics<parallel>], iteration_bounds = array<i64: 1, 1>, scalar_prefetch = 0 : i64, scratch_operands = 0 : i64, tpu.core_type = #tpu.core_type<tc>, window_params = [{transform_indices = @transform_0, window_bounds = array<i64: 8, 32>}, {pipeline_mode = #tpu.pipeline_mode<synchronous>, transform_indices = @transform_1, window_bounds = array<i64: 32, 32>}, {transform_indices = @transform_2, window_bounds = array<i64: 1, 32>}, {transform_indices = @transform_3, window_bounds = array<i64: 8, 32>}]} {
    %c0 = arith.constant 0 : index
    %c0_0 = arith.constant 0 : index
    %0 = vector.load %arg2[%c0, %c0_0] : memref<8x32xf32, #tpu.memory_space<vmem>>, vector<8x32xf32>
    %c0_1 = arith.constant 0 : index
    %c0_2 = arith.constant 0 : index
    %1 = vector.load %arg3[%c0_1, %c0_2] : memref<32x32xf32, #tpu.memory_space<vmem>>, vector<32x32xf32>
    %cst = arith.constant dense<0.000000e+00> : vector<8x32xf32>
    %2 = tpu.matmul %0, %1, %cst {dimension_numbers = #tpu.dot_dimension_numbers<[1], [0], [0], [1], [0, 0, 1, 1], [], []>} : vector<8x32xf32>, vector<32x32xf32>, vector<8x32xf32> -> vector<8x32xf32>
    %c0_3 = arith.constant 0 : index
    %c0_4 = arith.constant 0 : index
    %3 = vector.load %arg4[%c0_3, %c0_4] : memref<1x32xf32, #tpu.memory_space<vmem>>, vector<1x32xf32>
    %4 = vector.broadcast %3 : vector<1x32xf32> to vector<8x32xf32>
    %5 = arith.addf %2, %4 : vector<8x32xf32>
    %c0_5 = arith.constant 0 : index
    %c0_6 = arith.constant 0 : index
    %6 = vector.load %arg5[%c0_5, %c0_6] : memref<8x32xf32, #tpu.memory_space<vmem>>, vector<8x32xf32>
    tpu.vector_store %arg5[%c0_5, %c0_6], %5 {strides = array<i32>} : memref<8x32xf32, #tpu.memory_space<vmem>>, vector<8x32xf32>,
    return
  }
  func.func @transform_0(%arg0: i32, %arg1: i32) -> (i32, i32) {
    %c0_i32 = arith.constant 0 : i32
    %c0_i32_0 = arith.constant 0 : i32
    return %arg0, %c0_i32 : i32, i32
  }
  func.func @transform_1(%arg0: i32, %arg1: i32) -> (i32, i32) {
    %c0_i32 = arith.constant 0 : i32
    %c0_i32_0 = arith.constant 0 : i32
    return %c0_i32, %arg1 : i32, i32
  }
  func.func @transform_2(%arg0: i32, %arg1: i32) -> (i32, i32) {
    %c0_i32 = arith.constant 0 : i32
    %c0_i32_0 = arith.constant 0 : i32
    return %c0_i32, %arg1 : i32, i32
  }
  func.func @transform_3(%arg0: i32, %arg1: i32) -> (i32, i32) {
    %c0_i32 = arith.constant 0 : i32
    return %arg0, %arg1 : i32, i32
  }
}

</mosaic_0001>

<bundles_post_ra>
// kernel: tpu_custom_call.1
= control target key start
LH: loop header
LB: loop body
LE: loop exit
PB: predicated region body
PF: predicated region fallthrough
CT: control target
= control target key end

     0   :  { %8 = vsyncpa [#allocation3], 0  ;;  %s274_s0 = inlined_call_operand.hbm [shape: f32[8,32], index: 0, kind: input, shape index: {}]   ;;  %s275_s1 = inlined_call_operand.hbm [shape: f32[32,32], index: 1, kind: input, shape index: {}]   ;;  %s276_s2 = inlined_call_operand.vmem [shape: f32[1,32], index: 2, kind: input, shape index: {}]   ;;  %s277_s3 = inlined_call_operand.hbm [shape: f32[8,32], index: 3, kind: output, shape index: {}]  }
   0x1   :  { %9 = vsyncpa [#allocation6], 0 }
   0x2   :  { %10 = vsyncpa [#allocation4], 0  ;;  %s235_s12 = smov [#allocation2]   ;;  %s236_s14 = smov [#allocation5]  }
   0x3   :  { %s17_s13 = sshll.u32 %s235_s12, 4  ;;  %s26_s15 = sshll.u32 %s236_s14, 4  ;;  %s18_s13 = int_to_ptr.vmem [resolvable:$true] %s17_s13  ;;  %s27_s15 = int_to_ptr.vmem [resolvable:$true] %s26_s15 }
   0x4   :  { %s177_s16 = scalar_lea.vmem %s18_s13, 128  ;;  %p182_p1 = scmp.lt.s32.totalorder %s18_s13, %s18_s13 }
   0x5   :  { %p178_p0 = scmp.ne.s32.totalorder %s18_s13, %s177_s16  ;;  %p183_p2 = scmp.lt.s32.totalorder %s177_s16, %s177_s16 }
   0x7   :  { %p184_p3 = por %p183_p2, %p182_p1 }
   0x9   :  { %p185_p4 = pnand %p184_p3, %p178_p0 }
   0xb   :  { %188 = shalt.err (!%p185_p4)
}
   0xc   :  { %20 = dma.hbm_to_vmem [thread:$0]  %s274_s0, 128, %s18_s13, [#allocation3]  }
   0xd   :  { %s197_s19 = scalar_lea.vmem %s27_s15, 512  ;;  %p202_p6 = scmp.lt.s32.totalorder %s27_s15, %s27_s15 }
   0xe   :  { %p198_p5 = scmp.ne.s32.totalorder %s27_s15, %s197_s19  ;;  %p203_p7 = scmp.lt.s32.totalorder %s197_s19, %s197_s19 }
  0x10   :  { %p204_p8 = por %p203_p7, %p202_p6 }
  0x12   :  { %p205_p9 = pnand %p204_p8, %p198_p5 }
  0x14   :  { %208 = shalt.err (!%p205_p9)
}
  0x15   :  { %s237_s20 = smov 128   ;;  %s238_s21 = smov 8  }
  0x16   :  { %32 = dma.hbm_to_vmem [thread:$0]  %s275_s1, 512, %s27_s15, [#allocation6], %s237_s20, %s237_s20, %s238_s21  }
  0x17   :  { %229 = dma.done.wait [#allocation3], 128  }
  0x18   :  { %230 = vsyncadd [#allocation3], 4294967168 }
  0x19   :  { %231 = dma.done.wait [#allocation6], 512  }
  0x1a   :  { %232 = vsyncadd [#allocation6], 4294966784  ;;  %v239_v0 = vmov 0.0   ;;  %vm240_vm0 = vmmov 0   ;;  %v45_v1 = vld [vmem:[#allocation5 + $0x18] sm:$0xff]  ;;  %v44_v2 = vld [vmem:[#allocation5 + $0x10] sm:$0xff] }
  0x1b   :  { %151 = vmatprep.subr.mxu0 %v239_v0  ;;  %159 = vmatprep.mubr.msk.f32.mxu0 %vm240_vm0, %v239_v0  ;;  %v43_v3 = vld [vmem:[#allocation5 + $0x8] sm:$0xff]  ;;  %v42_v4 = vld [vmem:[#allocation5] sm:$0xff]  ;;  %v41_v5 = vld [vmem:[#allocation2] sm:$0xff]  ;;  %vm53_vm1 = vcmask 261120   ;;  %s241_s24 = smov [#allocation7]  }
  0x1c   :  { %152 = vmatpush3.msra.mxu0 %v45_v1  ;;  %v144_v6 = vld [vmem:[%s276_s2] ss:$0 sm:$0xff]  ;;  %s134_s25 = sshll.u32 %s241_s24, 4  ;;  %s135_s25 = int_to_ptr.vmem [resolvable:$true] %s134_s25 }
  0x1d   :  { %153 = vmatprep.subr.mxu0 %v239_v0  ;;  %s209_s26 = scalar_lea.vmem %s135_s25, 128  ;;  %p214_p11 = scmp.lt.s32.totalorder %s135_s25, %s135_s25 }
  0x1e   :  { %154 = vmatpush3.msra.mxu0 %v44_v2  ;;  %p210_p10 = scmp.ne.s32.totalorder %s135_s25, %s209_s26  ;;  %p215_p12 = scmp.lt.s32.totalorder %s209_s26, %s209_s26 }
  0x1f   :  { %155 = vmatprep.subr.mxu0 %v239_v0 }
  0x20   :  { %156 = vmatpush3.msra.mxu0 %v43_v3  ;;  %p216_p13 = por %p215_p12, %p214_p11 }
  0x21   :  { %157 = vmatprep.subr.mxu0 %v239_v0 }
  0x22   :  { %158 = vmatpush3.msra.mxu0 %v42_v4  ;;  %p217_p0 = pnand %p216_p13, %p210_p10 }
  0x23   :  { %160 = vmatmul.mubr.msk.f32.vlgmr.msra.gmra.mxu0 %vm53_vm1, %v41_v5 }
  0xe3   :  { %v123_v7 = vpop.f32.mrf.mxu0 }
  0xe4   :  { %v124_v8 = vadd.f32 %v144_v6, %v123_v7 }
  0xe5   :  { %v161_v9 = vpop.f32.mrf.mxu0 }
  0xe6   :  { %127 = vst.msk [vmem:[#allocation7] sm:$0xff] %vm53_vm1, %v124_v8 }
  0xe7   :  { %220 = shalt.err (!%p217_p0)
}
  0xe8   :  { %137 = dma.vmem_to_hbm [thread:$0]  %s135_s25, 128, %s277_s3, [#allocation4]  }
  0xe9   :  { %233 = dma.done.wait [#allocation4], 128  }
  0xea   :  { %234 = vsyncadd [#allocation4], 4294967168 }
  0xeb   :  { %141 = vsyncpa [#allocation3], 1 }
  0xec   :  { %142 = vsyncpa [#allocation6], 1 }
  0xed   :  { %143 = vsyncpa [#allocation4], 1 }

</bundles_post_ra>
